<compile_context>
chip_gen: v6e
topology: v6e:2x2x1
jax: 0.10.0
libtpu: 0.0.40
codegen_flags: <defaults>
</compile_context>

<pallas_src>
import functools
import math

import jax
import jax.numpy as jnp
from jax.experimental import pallas as pl
from jax.experimental.pallas import tpu as pltpu


# ----------------------------------------------------------------------------
# helpers
# ----------------------------------------------------------------------------
def _round_up(x, m):
    return (x + m - 1) // m * m


def _tile_rows(M):
    """Row tile (<=256, multiple of 16) and padded M.  Never a full huge dim."""
    for t in (256, 128, 64, 32, 16):
        if M % t == 0:
            return t, M
    t = 16 if M < 256 else 256
    return t, _round_up(M, t)


_K_CAP = 2304  # keeps A/B blocks ~1.1 MiB each at tm=tn=256 (fits v5e default)


def _tile_k(K):
    """K tile (<= _K_CAP) and padded K."""
    if K <= _K_CAP:
        return K, K
    for t in (2304, 2048, 1536, 1280, 1152, 1024, 896, 768, 640, 512, 384, 256, 128):
        if K % t == 0:
            return t, K
    return 2048, _round_up(K, 2048)


def _tile_cols(N):
    if N <= 256:
        return N
    if N % 256 == 0:
        return 256
    assert N % 128 == 0, N
    return 128


def _tile_h(Ho, cap=8):
    for t in range(min(cap, Ho), 1, -1):
        if Ho % t == 0:
            return t
    return 1


# ----------------------------------------------------------------------------
# Fused matmul:  out = [relu]( (A @ B) * scale + shift [+ residual] )
# A, B, residual bf16; accumulation + epilogue math f32.
# ----------------------------------------------------------------------------
def _affine_epilogue(y, s_ref, t_ref, r_ref, relu):
    y = y * s_ref[...] + t_ref[...]
    if r_ref is not None:
        y = y + r_ref[...].astype(jnp.float32)
    if relu:
        y = jnp.maximum(y, 0.0)
    return y


def _mm_single_kernel(*refs, relu, has_res):
    if has_res:
        a_ref, b_ref, s_ref, t_ref, r_ref, o_ref = refs
    else:
        a_ref, b_ref, s_ref, t_ref, o_ref = refs
        r_ref = None
    y = jnp.dot(a_ref[...], b_ref[...], preferred_element_type=jnp.float32)
    o_ref[...] = _affine_epilogue(y, s_ref, t_ref, r_ref, relu).astype(o_ref.dtype)


def _mm_multi_kernel(*refs, relu, has_res):
    if has_res:
        a_ref, b_ref, s_ref, t_ref, r_ref, o_ref, acc_ref = refs
    else:
        a_ref, b_ref, s_ref, t_ref, o_ref, acc_ref = refs
        r_ref = None

    @pl.when(pl.program_id(2) == 0)
    def _():
        acc_ref[...] = jnp.zeros_like(acc_ref)

    acc_ref[...] += jnp.dot(a_ref[...], b_ref[...],
                            preferred_element_type=jnp.float32)

    @pl.when(pl.program_id(2) == pl.num_programs(2) - 1)
    def _():
        o_ref[...] = _affine_epilogue(acc_ref[...], s_ref, t_ref, r_ref,
                                      relu).astype(o_ref.dtype)


def fused_matmul(a, b, scale, shift, *, relu, residual=None,
                 out_dtype=jnp.bfloat16):
    """(M, K) @ (K, N) with fused per-column affine (+residual, +ReLU)."""
    M, K = a.shape
    Kb, N = b.shape
    assert K == Kb

    tk, Kp = _tile_k(K)
    if Kp != K:  # not hit by this network; kept for robustness
        a = jnp.pad(a, ((0, 0), (0, Kp - K)))
        b = jnp.pad(b, ((0, Kp - K), (0, 0)))
    tm, Mp = _tile_rows(M)
    if Mp != M:
        a = jnp.pad(a, ((0, Mp - M), (0, 0)))
        if residual is not None:
            residual = jnp.pad(residual, ((0, Mp - M), (0, 0)))
    tn = _tile_cols(N)
    nk = Kp // tk
    grid = (Mp // tm, N // tn, nk)

    scale2 = scale.reshape(1, N).astype(jnp.float32)
    shift2 = shift.reshape(1, N).astype(jnp.float32)

    in_specs = [pl.BlockSpec((tm, tk), lambda i, j, k: (i, k)),
                pl.BlockSpec((tk, tn), lambda i, j, k: (k, j)),
                pl.BlockSpec((1, tn), lambda i, j, k: (0, j)),
                pl.BlockSpec((1, tn), lambda i, j, k: (0, j))]
    args = [a, b, scale2, shift2]
    has_res = residual is not None
    if has_res:
        in_specs.append(pl.BlockSpec((tm, tn), lambda i, j, k: (i, j)))
        args.append(residual)

    if nk == 1:
        kernel = functools.partial(_mm_single_kernel, relu=relu, has_res=has_res)
        scratch = []
    else:
        kernel = functools.partial(_mm_multi_kernel, relu=relu, has_res=has_res)
        scratch = [pltpu.VMEM((tm, tn), jnp.float32)]

    out = pl.pallas_call(
        kernel,
        out_shape=jax.ShapeDtypeStruct((Mp, N), out_dtype),
        grid_spec=pltpu.PrefetchScalarGridSpec(
            num_scalar_prefetch=0,
            grid=grid,
            in_specs=in_specs,
            out_specs=pl.BlockSpec((tm, tn), lambda i, j, k: (i, j)),
            scratch_shapes=scratch),
        compiler_params=pltpu.CompilerParams(
            dimension_semantics=("parallel", "parallel", "arbitrary")),
    )(*args)
    if Mp != M:
        out = out[:M]
    return out


# ----------------------------------------------------------------------------
# 3x3 / stride-1 conv (+ fused BN / ReLU):  taps folded inside the kernel,
# whole padded per-image feature map resident in VMEM -- no im2col slab.
# ----------------------------------------------------------------------------
def _conv3x3_s1_kernel(x_ref, w_ref, s_ref, t_ref, o_ref, *, th, Wo, relu):
    hb = pl.program_id(2)
    for r in range(th):
        row0 = hb * th + r
        acc = None
        for dy in range(3):
            for dx in range(3):
                a = x_ref[0, row0 + dy, pl.ds(dx, Wo), :]          # (Wo, Cin)
                part = jnp.dot(a, w_ref[3 * dy + dx],
                               preferred_element_type=jnp.float32)  # (Wo, tn)
                acc = part if acc is None else acc + part
        y = acc * s_ref[...] + t_ref[...]
        if relu:
            y = jnp.maximum(y, 0.0)
        o_ref[0, r] = y.astype(o_ref.dtype)


def conv3x3_s1_bn(x, p, *, relu):
    B, H, W, Cin = x.shape
    w9 = p['w']                                  # (9, Cin, Cout) bf16
    Cout = w9.shape[-1]
    xp = jnp.pad(x, ((0, 0), (1, 1), (1, 1), (0, 0)))
    Hp, Wp = H + 2, W + 2
    Ho, Wo = H, W

    tn = Cout if Cout <= 256 else 256
    NJ = Cout // tn
    th = _tile_h(Ho)
    NH = Ho // th

    scale2 = p['scale'].reshape(1, Cout).astype(jnp.float32)
    shift2 = p['shift'].reshape(1, Cout).astype(jnp.float32)

    kernel = functools.partial(_conv3x3_s1_kernel, th=th, Wo=Wo, relu=relu)
    out = pl.pallas_call(
        kernel,
        out_shape=jax.ShapeDtypeStruct((B, Ho, Wo, Cout), jnp.bfloat16),
        grid_spec=pltpu.PrefetchScalarGridSpec(
            num_scalar_prefetch=0,
            grid=(NJ, B, NH),
            in_specs=[
                # whole padded image of batch b, resident across (j, h)
                pl.BlockSpec((1, Hp, Wp, Cin), lambda j, b, h: (b, 0, 0, 0)),
                # all 9 taps of one Cout tile, resident across (b, h)
                pl.BlockSpec((9, Cin, tn), lambda j, b, h: (0, 0, j)),
                pl.BlockSpec((1, tn), lambda j, b, h: (0, j)),
                pl.BlockSpec((1, tn), lambda j, b, h: (0, j)),
            ],
            out_specs=pl.BlockSpec((1, th, Wo, tn), lambda j, b, h: (b, h, 0, j)),
        ),
        compiler_params=pltpu.CompilerParams(
            dimension_semantics=("parallel", "parallel", "parallel")),
    )(xp, w9, scale2, shift2)
    return out


# ----------------------------------------------------------------------------
# Max-pool 3x3 / stride 2 / pad 1 -- in-kernel running max over the 9 taps.
# ----------------------------------------------------------------------------
def _maxpool3x3s2_kernel(xe_ref, xo_ref, o_ref, *, th, Wo):
    hb = pl.program_id(1)
    for r in range(th):
        ho = hb * th + r
        m = None
        for dy in range(3):
            row = 2 * ho + dy
            for v in (xe_ref[0, row, pl.ds(0, Wo), :],   # dx = 0 -> even col
                      xo_ref[0, row, pl.ds(0, Wo), :],   # dx = 1 -> odd col
                      xe_ref[0, row, pl.ds(1, Wo), :]):  # dx = 2 -> even col+1
                m = v if m is None else jnp.maximum(m, v)
        o_ref[0, r] = m


def maxpool3x3s2(x):
    """3x3/2/pad-1 max-pool.  Input must be >= 0 (post-ReLU): zero padding is
    then equivalent to -inf padding."""
    B, H, W, C = x.shape
    assert H % 2 == 0 and W % 2 == 0
    xp = jnp.pad(x, ((0, 0), (1, 1), (1, 1), (0, 0)))
    Hp = H + 2
    Ho, Wo = H // 2, W // 2
    # one-time W parity split (2 cheap slices) so the stride-2 column access
    # becomes a contiguous slice inside the kernel.
    xe = xp[:, :, 0::2, :]        # (B, Hp, Wo + 1, C)
    xo = xp[:, :, 1::2, :]        # (B, Hp, Wo + 1, C)

    th = _tile_h(Ho)
    NH = Ho // th
    out = pl.pallas_call(
        functools.partial(_maxpool3x3s2_kernel, th=th, Wo=Wo),
        out_shape=jax.ShapeDtypeStruct((B, Ho, Wo, C), x.dtype),
        grid_spec=pltpu.PrefetchScalarGridSpec(
            num_scalar_prefetch=0,
            grid=(B, NH),
            in_specs=[
                pl.BlockSpec((1, Hp, Wo + 1, C), lambda b, h: (b, 0, 0, 0)),
                pl.BlockSpec((1, Hp, Wo + 1, C), lambda b, h: (b, 0, 0, 0)),
            ],
            out_specs=pl.BlockSpec((1, th, Wo, C), lambda b, h: (b, h, 0, 0)),
        ),
        compiler_params=pltpu.CompilerParams(
            dimension_semantics=("parallel", "parallel")),
    )(xe, xo)
    return out


# ----------------------------------------------------------------------------
# Global average pool
# ----------------------------------------------------------------------------
def _gap_kernel(x_ref, o_ref):
    o_ref[...] = jnp.mean(x_ref[...].astype(jnp.float32), axis=1).astype(o_ref.dtype)


def global_avg_pool(x):
    B, H, W, C = x.shape
    x3 = x.reshape(B, H * W, C)
    Bp = _round_up(B, 8)
    if Bp != B:
        x3 = jnp.pad(x3, ((0, Bp - B), (0, 0), (0, 0)))
    bt = 8
    y = pl.pallas_call(
        _gap_kernel,
        out_shape=jax.ShapeDtypeStruct((Bp, C), x.dtype),
        grid=(Bp // bt,),
        in_specs=[pl.BlockSpec((bt, H * W, C), lambda i: (i, 0, 0))],
        out_specs=pl.BlockSpec((bt, C), lambda i: (i, 0)),
        compiler_params=pltpu.CompilerParams(
            dimension_semantics=("parallel",)),
    )(x3)
    return y[:B]


# ----------------------------------------------------------------------------
# Conv (+ fused BN / ReLU / residual) dispatcher
# ----------------------------------------------------------------------------
def conv2d_bn(x, p, *, relu, residual=None):
    kh, kw, stride, padding = p['kh'], p['kw'], p['stride'], p['padding']
    B, H, W, Cin = x.shape

    if kh == 3 and kw == 3 and stride == 1 and padding == 1:
        assert residual is None
        return conv3x3_s1_bn(x, p, relu=relu)

    if kh == 1 and kw == 1 and padding == 0:
        xs = x[:, ::stride, ::stride, :] if stride != 1 else x
        _, Ho, Wo, _ = xs.shape
        a = xs.reshape(B * Ho * Wo, Cin)                  # free reshape (NHWC)
        Cout = p['w'].shape[1]
        res2 = (residual.reshape(B * Ho * Wo, Cout)
                if residual is not None else None)
        y = fused_matmul(a, p['w'], p['scale'], p['shift'], relu=relu,
                         residual=res2)
        return y.reshape(B, Ho, Wo, Cout)

    # General path: 7x7/2 stem and the three 3x3/2 downsampling convs.
    # TODO(synk): fold these strided taps into the kernel too (parity-split
    # input, as done for max-pool) to remove the remaining im2col HBM slab.
    xp = jnp.pad(x, ((0, 0), (padding, padding), (padding, padding), (0, 0)))
    Hp, Wp = H + 2 * padding, W + 2 * padding
    Ho = (Hp - kh) // stride + 1
    Wo = (Wp - kw) // stride + 1
    cols = [xp[:, dy:dy + stride * (Ho - 1) + 1:stride,
               dx:dx + stride * (Wo - 1) + 1:stride, :]
            for dy in range(kh) for dx in range(kw)]
    a = jnp.stack(cols, axis=3).reshape(B * Ho * Wo, kh * kw * Cin)
    Cout = p['w'].shape[1]
    res2 = (residual.reshape(B * Ho * Wo, Cout)
            if residual is not None else None)
    y = fused_matmul(a, p['w'], p['scale'], p['shift'], relu=relu,
                     residual=res2)
    return y.reshape(B, Ho, Wo, Cout)


# ----------------------------------------------------------------------------
# Deterministic synthetic parameters (ResNet50 shapes + Linear(2048, 22) head),
# pre-transformed to kernel layout at build time.
# ----------------------------------------------------------------------------
class ParamGen:
    def __init__(self, key):
        self.key = key
        self.n = 0

    def _next(self):
        self.n += 1
        return jax.random.fold_in(self.key, self.n)

    def conv(self, cout, cin, kh, kw):
        fan_in = cin * kh * kw
        return jax.random.normal(self._next(), (cout, cin, kh, kw),
                                 jnp.float32) * (1.0 / math.sqrt(fan_in))

    def bn(self, c):
        gamma = 1.0 + 0.1 * jax.random.normal(self._next(), (c,), jnp.float32)
        beta = 0.1 * jax.random.normal(self._next(), (c,), jnp.float32)
        mean = 0.1 * jax.random.normal(self._next(), (c,), jnp.float32)
        var = 1.0 + 0.1 * jax.random.uniform(self._next(), (c,), jnp.float32)
        scale = gamma / jnp.sqrt(var + 1e-5)
        shift = beta - mean * scale
        return scale, shift

    def linear(self, cout, cin):
        w = jax.random.normal(self._next(), (cout, cin),
                              jnp.float32) * (1.0 / math.sqrt(cin))
        b = 0.01 * jax.random.normal(self._next(), (cout,), jnp.float32)
        return w, b


def conv_bn_params(gen, cout, cin, kh, kw, stride, padding):
    w = gen.conv(cout, cin, kh, kw)                       # (Cout, Cin, kh, kw)
    wt = jnp.transpose(w, (2, 3, 1, 0))                   # (kh, kw, Cin, Cout)
    scale, shift = gen.bn(cout)                           # eval BN folded
    p = {'scale': scale, 'shift': shift,
         'kh': kh, 'kw': kw, 'stride': stride, 'padding': padding}
    if kh == 3 and kw == 3 and stride == 1 and padding == 1:
        p['w'] = wt.reshape(9, cin, cout).astype(jnp.bfloat16)   # tap-major
    else:
        p['w'] = wt.reshape(kh * kw * cin, cout).astype(jnp.bfloat16)
    return p


def make_bottleneck_params(gen, cin, width, stride):
    p = {'conv1': conv_bn_params(gen, width, cin, 1, 1, 1, 0),
         'conv2': conv_bn_params(gen, width, width, 3, 3, stride, 1),
         'conv3': conv_bn_params(gen, width * 4, width, 1, 1, 1, 0)}
    if stride != 1 or cin != width * 4:
        p['down'] = conv_bn_params(gen, width * 4, cin, 1, 1, stride, 0)
    return p


def make_params(key):
    gen = ParamGen(key)
    params = {'stem': conv_bn_params(gen, 64, 3, 7, 7, 2, 3)}
    cin = 64
    layers = []
    for (nblocks, width, stride) in [(3, 64, 1), (4, 128, 2),
                                     (6, 256, 2), (3, 512, 2)]:
        blocks = []
        for i in range(nblocks):
            s = stride if i == 0 else 1
            blocks.append(make_bottleneck_params(gen, cin, width, s))
            cin = width * 4
        layers.append(blocks)
    params['layers'] = layers

    # self.fc = Sequential(Dropout(0.0), Linear(2048, 12 + 8 + 2)); pad the
    # 22 output columns to 128 for lane-dense stores, slice back at the end.
    fc_w, fc_b = gen.linear(12 + 8 + 2, 2048)
    n_pad = 128
    fc_wp = jnp.zeros((2048, n_pad), jnp.float32).at[:, :22].set(fc_w.T)
    fc_bp = jnp.zeros((n_pad,), jnp.float32).at[:22].set(fc_b)
    params['fc_w'] = fc_wp.astype(jnp.bfloat16)
    params['fc_scale'] = jnp.ones((n_pad,), jnp.float32)
    params['fc_b'] = fc_bp
    return params


# ----------------------------------------------------------------------------
# Forward pass (== ImageModel.forward)
# ----------------------------------------------------------------------------
def bottleneck_forward(x, p):
    out = conv2d_bn(x, p['conv1'], relu=True)
    out = conv2d_bn(out, p['conv2'], relu=True)
    identity = conv2d_bn(x, p['down'], relu=False) if 'down' in p else x
    # conv3 + BN3 + residual add + ReLU fused into one matmul epilogue
    return conv2d_bn(out, p['conv3'], relu=True, residual=identity)


def image_model_forward(params, x):
    clip = x['clip']                            # (B, 3, 1, H, W)
    assert clip.shape[2] == 1
    clip = clip[:, :, 0]                        # squeeze(2) -> NCHW
    h = jnp.transpose(clip, (0, 2, 3, 1)).astype(jnp.bfloat16)   # -> NHWC bf16
    h = conv2d_bn(h, params['stem'], relu=True)
    h = maxpool3x3s2(h)                         # input is post-ReLU (>= 0)
    for layer in params['layers']:
        for blk in layer:
            h = bottleneck_forward(h, blk)
    features = global_avg_pool(h)               # (B, 2048); base_model.fc = Dummy
    logits = fused_matmul(features, params['fc_w'], params['fc_scale'],
                          params['fc_b'], relu=False, out_dtype=jnp.float32)
    return logits[:, :22]


if __name__ == "__main__":
    key = jax.random.PRNGKey(0)
    params = make_params(jax.random.fold_in(key, 1))
    # small input consistent with forward(): x['clip'] is (B, 3, T=1, H, W)
    clip = jax.random.normal(jax.random.fold_in(key, 2), (2, 3, 1, 32, 32),
                             jnp.float32)
    out = image_model_forward(params, {'clip': clip})
    out = jax.block_until_ready(out)
    assert out.shape == (2, 22), out.shape
    assert bool(jnp.all(jnp.isfinite(out)))
    print("KERNEL_OK")
</pallas_src>

<mosaic_0001>
module attributes {stable_mosaic.version = 11 : i64} {
  func.func @_mm_single_kernel(%arg0: i32, %arg1: i32, %arg2: i32, %arg3: memref<256x147xbf16, #tpu.memory_space<vmem>>, %arg4: memref<147x64xbf16, #tpu.memory_space<vmem>>, %arg5: memref<1x64xf32, #tpu.memory_space<vmem>>, %arg6: memref<1x64xf32, #tpu.memory_space<vmem>>, %arg7: memref<256x64xbf16, #tpu.memory_space<vmem>>) attributes {dimension_semantics = [#tpu.dimension_semantics<parallel>, #tpu.dimension_semantics<parallel>, #tpu.dimension_semantics<arbitrary>], iteration_bounds = array<i64: 2, 1, 1>, scalar_prefetch = 0 : i64, scratch_operands = 0 : i64, tpu.core_type = #tpu.core_type<tc>, window_params = [{transform_indices = @transform_0, window_bounds = array<i64: 256, 147>}, {transform_indices = @transform_1, window_bounds = array<i64: 147, 64>}, {transform_indices = @transform_2, window_bounds = array<i64: 1, 64>}, {transform_indices = @transform_3, window_bounds = array<i64: 1, 64>}, {transform_indices = @transform_4, window_bounds = array<i64: 256, 64>}]} {
    %c0 = arith.constant 0 : index
    %c0_0 = arith.constant 0 : index
    %0 = vector.load %arg3[%c0, %c0_0] : memref<256x147xbf16, #tpu.memory_space<vmem>>, vector<256x147xbf16>
    %c0_1 = arith.constant 0 : index
    %c0_2 = arith.constant 0 : index
    %1 = vector.load %arg4[%c0_1, %c0_2] : memref<147x64xbf16, #tpu.memory_space<vmem>>, vector<147x64xbf16>
    %cst = arith.constant dense<0.000000e+00> : vector<256x64xf32>
    %2 = tpu.matmul %0, %1, %cst {dimension_numbers = #tpu.dot_dimension_numbers<[1], [0], [0], [1], [0, 0, 1, 1], [], []>} : vector<256x147xbf16>, vector<147x64xbf16>, vector<256x64xf32> -> vector<256x64xf32>
    %c0_3 = arith.constant 0 : index
    %c0_4 = arith.constant 0 : index
    %3 = vector.load %arg5[%c0_3, %c0_4] : memref<1x64xf32, #tpu.memory_space<vmem>>, vector<1x64xf32>
    %4 = vector.broadcast %3 : vector<1x64xf32> to vector<256x64xf32>
    %5 = arith.mulf %2, %4 : vector<256x64xf32>
    %c0_5 = arith.constant 0 : index
    %c0_6 = arith.constant 0 : index
    %6 = vector.load %arg6[%c0_5, %c0_6] : memref<1x64xf32, #tpu.memory_space<vmem>>, vector<1x64xf32>
    %7 = vector.broadcast %6 : vector<1x64xf32> to vector<256x64xf32>
    %8 = arith.addf %5, %7 : vector<256x64xf32>
    %cst_7 = arith.constant 0.000000e+00 : f32
    %9 = vector.broadcast %cst_7 : f32 to vector<256x64xf32>
    %10 = arith.maximumf %8, %9 : vector<256x64xf32>
    %11 = arith.truncf %10 : vector<256x64xf32> to vector<256x64xbf16>
    %c0_8 = arith.constant 0 : index
    %c0_9 = arith.constant 0 : index
    %12 = vector.load %arg7[%c0_8, %c0_9] : memref<256x64xbf16, #tpu.memory_space<vmem>>, vector<256x64xbf16>
    tpu.vector_store %arg7[%c0_8, %c0_9], %11 {strides = array<i32>} : memref<256x64xbf16, #tpu.memory_space<vmem>>, vector<256x64xbf16>,
    return
  }
  func.func @transform_0(%arg0: i32, %arg1: i32, %arg2: i32) -> (i32, i32) {
    %c0_i32 = arith.constant 0 : i32
    return %arg0, %arg2 : i32, i32
  }
  func.func @transform_1(%arg0: i32, %arg1: i32, %arg2: i32) -> (i32, i32) {
    %c0_i32 = arith.constant 0 : i32
    return %arg2, %arg1 : i32, i32
  }
  func.func @transform_2(%arg0: i32, %arg1: i32, %arg2: i32) -> (i32, i32) {
    %c0_i32 = arith.constant 0 : i32
    %c0_i32_0 = arith.constant 0 : i32
    return %c0_i32, %arg1 : i32, i32
  }
  func.func @transform_3(%arg0: i32, %arg1: i32, %arg2: i32) -> (i32, i32) {
    %c0_i32 = arith.constant 0 : i32
    %c0_i32_0 = arith.constant 0 : i32
    return %c0_i32, %arg1 : i32, i32
  }
  func.func @transform_4(%arg0: i32, %arg1: i32, %arg2: i32) -> (i32, i32) {
    %c0_i32 = arith.constant 0 : i32
    return %arg0, %arg1 : i32, i32
  }
}

</mosaic_0001>

<bundles_post_ra>
// kernel: tpu_custom_call.1
= control target key start
LH: loop header
LB: loop body
LE: loop exit
PB: predicated region body
PF: predicated region fallthrough
CT: control target
= control target key end

     0   :  { %s1470_s15 = smov 0   ;;  %s1472_s16 = smov 0   ;;  %s1727_s0 = inlined_call_operand.vmem [shape: bf16[512,147], index: 0, kind: input, shape index: {}]   ;;  %s1728_s1 = inlined_call_operand.vmem [shape: bf16[147,64], index: 1, kind: input, shape index: {}]   ;;  %s1729_s2 = inlined_call_operand.vmem [shape: f32[1,64], index: 2, kind: input, shape index: {}]   ;;  %s1730_s3 = inlined_call_operand.vmem [shape: f32[1,64], index: 3, kind: input, shape index: {}]   ;;  %s1731_s4 = inlined_call_operand.vmem [shape: bf16[512,64], index: 4, kind: output, shape index: {}]  }
   0x1   :  { %s1474_s17 = smov 0  }
   0x2 LB: > { %s33_s18 = sadd.s32 1, %s1437_s16  ;;  %p1182_p0 = scmp.ge.s32.totalorder %s1441_s17, 1  ;;  %s1441_s17 = sphi %s1474_s17, %s14_s17   ;;  %s1437_s16 = sphi %s1472_s16, %s1733_s16   ;;  %s1433_s15 = sphi %s1470_s15, %s1732_s15  }
   0x3   : > { %p35_p1 = scmp.ge.s32.totalorder %s33_s18, 2  ;;  %p224_p2 = scmp.lt.s32.totalorder %s1441_s17, 3 }
   0x5   : > { %s1735_s18 = smov (%p35_p1, %s33_s18), 0  ;;  %p225_p3 = pnand %p1182_p0, %p224_p2 }
   0x6   : > { %s1183_s25 = sshll.u32 (!%p225_p3), %s1433_s15, 5 }
   0x7   : > { %228 = sbr.rel (%p225_p3) target bundleno = 315 (0x13b), region = 36  ;;  %p274_p4 = scmp.lt.s32.totalorder (!%p225_p3), %s1183_s25, 63 }
   0xc   : > { %v1361_v0 = vld [vmem:[%s1728_s1 + $0x38] sm:$0xff]   ;;  %v1443_v1 = vmov 0   ;;  %v1362_v2 = vld [vmem:[%s1728_s1 + $0x30] sm:$0xff]   ;;  %v1363_v3 = vld [vmem:[%s1728_s1 + $0x28] sm:$0xff]   ;;  %s1737_s25 = smov (!%p274_p4, %s1183_s25), 63  ;;  %vm561_vm0 = vcmask 154624  }
   0xd   : > { %617 = vmatprep.subr.bf16.mxu0 %v1443_v1  ;;  %1315 = vmatprep.subr.bf16.mxu1 %v1443_v1  ;;  %v1364_v4 = vld [vmem:[%s1728_s1 + $0x20] sm:$0xff]   ;;  %s1282_s28 = sshll.u32 %s1737_s25, 3  ;;  %v1365_v5 = vld [vmem:[%s1728_s1 + $0x18] sm:$0xff]   ;;  %v1366_v8 = vld [vmem:[%s1728_s1 + $0x10] sm:$0xff]   ;;  %vm610_vm1 = vcmask 1040384   ;;  %vm611_vm2 = vcmask 1041408  }
   0xe   : > { %618 = vmatpush1.bf16.msra.mxu0 %v1361_v0  ;;  %1325 = vmatpush1.bf16.msra.mxu1 %v1361_v0  ;;  %s1506_s5 = scalar_lea.vmem %s1727_s0, %s1282_s28  ;;  %v1367_v9 = vld [vmem:[%s1728_s1 + $0x8] sm:$0xff]   ;;  %v1444_v10 = vmov 65535   ;;  %v1368_v12 = vld [vmem:[%s1728_s1] sm:$0xff]   ;;  %s1187_s26 = sshll.u32 %s1737_s25, 2  ;;  %vm1016_vm3 = vcmask 519168  }
   0xf   : > { %619 = vmatprep.subr.bf16.mxu0 %v1443_v1  ;;  %1316 = vmatprep.subr.bf16.mxu1 %v1443_v1  ;;  %v1373_v6 = vld [vmem:[%s1506_s5 + $0x4] ss:$8 sps:$4 sm:$0xff]   ;;  %v612_v11 = vsel %vm610_vm1, 4294967295, %v1444_v10  ;;  %v1369_v13 = vld [vmem:[%s1728_s1 + $0x48] ss:$0 sps:$4 sm:$0x33]   ;;  %s1594_s29 = scalar_lea.vmem %s1731_s4, %s1187_s26 }
  0x10   : > { %v1376_v7 = vld [vmem:[%s1506_s5 + $0x84] ss:$8 sps:$4 sm:$0xff]   ;;  %1230 = vmatprep.mubr.msk.bf16.mxu0 %vm561_vm0, %v1373_v6  ;;  %v613_v14 = vsel %vm611_vm2, %v612_v11, 0  ;;  %v1371_v17 = vld [vmem:[%s1506_s5] ss:$8 sps:$4 sm:$0xff]  }
  0x11   : > { %1238 = vmatprep.mubr.msk.bf16.mxu1 %vm561_vm0, %v1376_v7  ;;  %v615_v15 = vand.u32 %v1369_v13, %v613_v14  ;;  %v1370_v16 = vld [vmem:[%s1728_s1 + $0x40] sm:$0xff]   ;;  %v1377_v19 = vld [vmem:[%s1506_s5 + $0x14] ss:$8 sps:$4 sm:$0xff]   ;;  %v1381_v21 = vld [vmem:[%s1506_s5 + $0x10] ss:$8 sps:$4 sm:$0xff]  }
  0x12   : > { %620 = vmatpush1.bf16.msra.mxu0 %v1362_v2  ;;  %1326 = vmatpush1.bf16.msra.mxu1 %v1362_v2  ;;  %v1374_v18 = vld [vmem:[%s1506_s5 + $0x80] ss:$8 sps:$4 sm:$0xff]   ;;  %v1379_v20 = vld [vmem:[%s1506_s5 + $0x94] ss:$8 sps:$4 sm:$0xff]   ;;  %v1382_v22 = vld [vmem:[%s1506_s5 + $0x90] ss:$8 sps:$4 sm:$0xff]  }
  0x13   : > { %621 = vmatprep.subr.bf16.mxu0 %v1443_v1  ;;  %1317 = vmatprep.subr.bf16.mxu1 %v1443_v1  ;;  %v1383_v23 = vld [vmem:[%s1506_s5 + $0x24] ss:$8 sps:$4 sm:$0xff]   ;;  %v1387_v25 = vld [vmem:[%s1506_s5 + $0x20] ss:$8 sps:$4 sm:$0xff]   ;;  %v1389_v27 = vld [vmem:[%s1506_s5 + $0x34] ss:$8 sps:$4 sm:$0xff]  }
  0x14   : > { %v1385_v24 = vld [vmem:[%s1506_s5 + $0xa4] ss:$8 sps:$4 sm:$0xff]   ;;  %v1388_v26 = vld [vmem:[%s1506_s5 + $0xa0] ss:$8 sps:$4 sm:$0xff]   ;;  %v1391_v28 = vld [vmem:[%s1506_s5 + $0xb4] ss:$8 sps:$4 sm:$0xff]  }
  0x15   : > { %v1393_v29 = vld [vmem:[%s1506_s5 + $0x30] ss:$8 sps:$4 sm:$0xff]   ;;  %v1395_v31 = vld [vmem:[%s1506_s5 + $0x44] ss:$8 sps:$4 sm:$0xff]   ;;  %v1399_v33 = vld [vmem:[%s1506_s5 + $0x40] ss:$8 sps:$4 sm:$0xff]  }
  0x16   : > { %622 = vmatpush1.bf16.msra.mxu0 %v1363_v3  ;;  %1327 = vmatpush1.bf16.msra.mxu1 %v1363_v3  ;;  %v1394_v30 = vld [vmem:[%s1506_s5 + $0xb0] ss:$8 sps:$4 sm:$0xff]   ;;  %v1397_v32 = vld [vmem:[%s1506_s5 + $0xc4] ss:$8 sps:$4 sm:$0xff]   ;;  %v1400_v34 = vld [vmem:[%s1506_s5 + $0xc0] ss:$8 sps:$4 sm:$0xff]  }
  0x17   : > { %623 = vmatprep.subr.bf16.mxu0 %v1443_v1  ;;  %1318 = vmatprep.subr.bf16.mxu1 %v1443_v1  ;;  %v1401_v35 = vld [vmem:[%s1506_s5 + $0x54] ss:$8 sps:$4 sm:$0xff]   ;;  %v1405_v37 = vld [vmem:[%s1506_s5 + $0x50] ss:$8 sps:$4 sm:$0xff]   ;;  %v1407_v39 = vld [vmem:[%s1506_s5 + $0x64] ss:$8 sps:$4 sm:$0xff]  }
  0x18   : > { %v1403_v36 = vld [vmem:[%s1506_s5 + $0xd4] ss:$8 sps:$4 sm:$0xff]   ;;  %v1406_v38 = vld [vmem:[%s1506_s5 + $0xd0] ss:$8 sps:$4 sm:$0xff]   ;;  %v1409_v40 = vld [vmem:[%s1506_s5 + $0xe4] ss:$8 sps:$4 sm:$0xff]  }
  0x19   : > { %v1411_v41 = vld [vmem:[%s1506_s5 + $0x60] ss:$8 sps:$4 sm:$0xff]   ;;  %v1413_v43 = vld [vmem:[%s1506_s5 + $0x74] ss:$8 sps:$4 sm:$0xff]   ;;  %v1417_v45 = vld [vmem:[%s1506_s5 + $0x70] ss:$8 sps:$4 sm:$0xff]  }
  0x1a   : > { %624 = vmatpush1.bf16.msra.mxu0 %v1364_v4  ;;  %1328 = vmatpush1.bf16.msra.mxu1 %v1364_v4  ;;  %v1412_v42 = vld [vmem:[%s1506_s5 + $0xe0] ss:$8 sps:$4 sm:$0xff]   ;;  %v1415_v44 = vld [vmem:[%s1506_s5 + $0xf4] ss:$8 sps:$4 sm:$0xff]   ;;  %v1418_v46 = vld [vmem:[%s1506_s5 + $0xf0] ss:$8 sps:$4 sm:$0xff]  }
  0x1b   : > { %625 = vmatprep.subr.bf16.mxu0 %v1443_v1  ;;  %1319 = vmatprep.subr.bf16.mxu1 %v1443_v1  ;;  %v1577_v47 = vld [vmem:[%s1729_s2] ss:$0 sm:$0xff] }
  0x1c   : > { %v1582_v49 = vld [vmem:[%s1730_s3] ss:$0 sm:$0xff] }
  0x1e   : > { %626 = vmatpush1.bf16.msra.mxu0 %v1365_v5  ;;  %1329 = vmatpush1.bf16.msra.mxu1 %v1365_v5 }
  0x1f   : > { %627 = vmatprep.subr.bf16.mxu0 %v1443_v1  ;;  %1320 = vmatprep.subr.bf16.mxu1 %v1443_v1 }
  0x22   : > { %628 = vmatpush1.bf16.msra.mxu0 %v1366_v8  ;;  %1330 = vmatpush1.bf16.msra.mxu1 %v1366_v8 }
  0x23   : > { %629 = vmatprep.subr.bf16.mxu0 %v1443_v1  ;;  %1321 = vmatprep.subr.bf16.mxu1 %v1443_v1 }
  0x26   : > { %630 = vmatpush1.bf16.msra.mxu0 %v1367_v9  ;;  %1331 = vmatpush1.bf16.msra.mxu1 %v1367_v9 }
  0x27   : > { %631 = vmatprep.subr.bf16.mxu0 %v1443_v1  ;;  %1322 = vmatprep.subr.bf16.mxu1 %v1443_v1 }
  0x2a   : > { %632 = vmatpush1.bf16.msra.mxu0 %v1368_v12  ;;  %1332 = vmatpush1.bf16.msra.mxu1 %v1368_v12 }
  0x2b   : > { %645 = vmatprep.subr.bf16.mxu0 %v1443_v1  ;;  %1323 = vmatprep.subr.bf16.mxu1 %v1443_v1 }
  0x2e   : > { %646 = vmatpush2.bf16.msra.mxu0 %v615_v15  ;;  %1333 = vmatpush2.bf16.msra.mxu1 %v615_v15 }
  0x2f   : > { %647 = vmatprep.subr.bf16.mxu0 %v1443_v1  ;;  %1324 = vmatprep.subr.bf16.mxu1 %v1443_v1 }
  0x32   : > { %648 = vmatpush2.bf16.msra.mxu0 %v1370_v16  ;;  %1334 = vmatpush2.bf16.msra.mxu1 %v1370_v16 }
  0x35   : > { %650 = vmatmul.mubr.bf16.vlgmr.msra.gmra.mxu0 %v1371_v17  ;;  %714 = vmatmul.mubr.bf16.vlgmr.msra.gmra.mxu1 %v1374_v18 }
  0x36   : > { %1231 = vmatprep.mubr.msk.bf16.mxu0 %vm561_vm0, %v1377_v19  ;;  %1239 = vmatprep.mubr.msk.bf16.mxu1 %vm561_vm0, %v1379_v20 }
  0x3d   : > { %658 = vmatmul.mubr.bf16.gmra.mxu0 %v1381_v21  ;;  %722 = vmatmul.mubr.bf16.gmra.mxu1 %v1382_v22 }
  0x3e   : > { %1232 = vmatprep.mubr.msk.bf16.mxu0 %vm561_vm0, %v1383_v23  ;;  %1240 = vmatprep.mubr.msk.bf16.mxu1 %vm561_vm0, %v1385_v24 }
  0x45   : > { %666 = vmatmul.mubr.bf16.gmra.mxu0 %v1387_v25  ;;  %730 = vmatmul.mubr.bf16.gmra.mxu1 %v1388_v26 }
  0x46   : > { %1233 = vmatprep.mubr.msk.bf16.mxu0 %vm561_vm0, %v1389_v27  ;;  %1241 = vmatprep.mubr.msk.bf16.mxu1 %vm561_vm0, %v1391_v28 }
  0x4d   : > { %674 = vmatmul.mubr.bf16.gmra.mxu0 %v1393_v29  ;;  %738 = vmatmul.mubr.bf16.gmra.mxu1 %v1394_v30 }
  0x4e   : > { %1234 = vmatprep.mubr.msk.bf16.mxu0 %vm561_vm0, %v1395_v31  ;;  %1242 = vmatprep.mubr.msk.bf16.mxu1 %vm561_vm0, %v1397_v32 }
  0x55   : > { %682 = vmatmul.mubr.bf16.gmra.mxu0 %v1399_v33  ;;  %746 = vmatmul.mubr.bf16.gmra.mxu1 %v1400_v34 }
  0x56   : > { %1235 = vmatprep.mubr.msk.bf16.mxu0 %vm561_vm0, %v1401_v35  ;;  %1243 = vmatprep.mubr.msk.bf16.mxu1 %vm561_vm0, %v1403_v36 }
  0x5d   : > { %690 = vmatmul.mubr.bf16.gmra.mxu0 %v1405_v37  ;;  %754 = vmatmul.mubr.bf16.gmra.mxu1 %v1406_v38 }
  0x5e   : > { %1236 = vmatprep.mubr.msk.bf16.mxu0 %vm561_vm0, %v1407_v39  ;;  %1244 = vmatprep.mubr.msk.bf16.mxu1 %vm561_vm0, %v1409_v40 }
  0x65   : > { %698 = vmatmul.mubr.bf16.gmra.mxu0 %v1411_v41  ;;  %762 = vmatmul.mubr.bf16.gmra.mxu1 %v1412_v42 }
  0x66   : > { %1237 = vmatprep.mubr.msk.bf16.mxu0 %vm561_vm0, %v1413_v43  ;;  %1245 = vmatprep.mubr.msk.bf16.mxu1 %vm561_vm0, %v1415_v44 }
  0x6d   : > { %706 = vmatmul.mubr.bf16.gmra.mxu0 %v1417_v45  ;;  %770 = vmatmul.mubr.bf16.gmra.mxu1 %v1418_v46 }
  0xf5   : > { %v651_v48 = vpop.f32.mrf.mxu0  ;;  %v715_v50 = vpop.f32.mrf.mxu1 }
  0xf6   : > { %v785_v51 = vmul.f32 %v1577_v47, %v651_v48  ;;  %v801_v52 = vmul.f32 %v1577_v47, %v715_v50 }
  0xf7   : > { %v653_v53 = vpop.f32.mrf.mxu0  ;;  %v717_v54 = vpop.f32.mrf.mxu1 }
  0xf8   : > { %v824_v55 = vadd.f32 %v1582_v49, %v785_v51  ;;  %v840_v56 = vadd.f32 %v1582_v49, %v801_v52 }
  0xf9   : > { %v654_v57 = vpop.f32.mrf.mxu0  ;;  %v718_v58 = vpop.f32.mrf.mxu1 }
  0xfa   : > { %v856_v59 = vmax.f32 %v824_v55, 0.0  ;;  %v872_v60 = vmax.f32 %v840_v56, 0.0  ;;  %v786_v61 = vmul.f32 %v1577_v47, %v654_v57  ;;  %v802_v62 = vmul.f32 %v1577_v47, %v718_v58 }
  0xfb   : > { %v656_v63 = vpop.f32.mrf.mxu0  ;;  %v720_v0 = vpop.f32.mrf.mxu1 }
  0xfc   : > { %v1283_v1 = vpack.c.bf16 %v856_v59, %v856_v59  ;;  %v1299_v2 = vpack.c.bf16 %v872_v60, %v872_v60  ;;  %v825_v3 = vadd.f32 %v1582_v49, %v786_v61  ;;  %v841_v4 = vadd.f32 %v1582_v49, %v802_v62 }
  0xfd   : > { %v659_v5 = vpop.f32.mrf.mxu0  ;;  %v723_v6 = vpop.f32.mrf.mxu1 }
  0xfe   : > { %1017 = vst.msk [vmem:[%s1594_s29] sm:$0xf] %vm1016_vm3, %v1283_v1  ;;  %1033 = vst.msk [vmem:[%s1594_s29 + $0x40] sm:$0xf] %vm1016_vm3, %v1299_v2  ;;  %v857_v7 = vmax.f32 %v825_v3, 0.0  ;;  %v873_v8 = vmax.f32 %v841_v4, 0.0  ;;  %v787_v9 = vmul.f32 %v1577_v47, %v659_v5  ;;  %v803_v10 = vmul.f32 %v1577_v47, %v723_v6 }
  0xff   : > { %v661_v11 = vpop.f32.mrf.mxu0  ;;  %v725_v12 = vpop.f32.mrf.mxu1 }
 0x100   : > { %v1284_v13 = vpack.c.bf16 %v857_v7, %v857_v7  ;;  %v1300_v14 = vpack.c.bf16 %v873_v8, %v873_v8  ;;  %v826_v15 = vadd.f32 %v1582_v49, %v787_v9  ;;  %v842_v16 = vadd.f32 %v1582_v49, %v803_v10 }
 0x101   : > { %v662_v17 = vpop.f32.mrf.mxu0  ;;  %v726_v18 = vpop.f32.mrf.mxu1 }
 0x102   : > { %1018 = vst.msk [vmem:[%s1594_s29 + $0x4] sm:$0xf] %vm1016_vm3, %v1284_v13  ;;  %1034 = vst.msk [vmem:[%s1594_s29 + $0x44] sm:$0xf] %vm1016_vm3, %v1300_v14  ;;  %v858_v19 = vmax.f32 %v826_v15, 0.0  ;;  %v874_v20 = vmax.f32 %v842_v16, 0.0  ;;  %v788_v21 = vmul.f32 %v1577_v47, %v662_v17  ;;  %v804_v22 = vmul.f32 %v1577_v47, %v726_v18 }
 0x103   : > { %v664_v23 = vpop.f32.mrf.mxu0  ;;  %v728_v24 = vpop.f32.mrf.mxu1 }
 0x104   : > { %v1285_v25 = vpack.c.bf16 %v858_v19, %v858_v19  ;;  %v1301_v26 = vpack.c.bf16 %v874_v20, %v874_v20  ;;  %v827_v27 = vadd.f32 %v1582_v49, %v788_v21  ;;  %v843_v28 = vadd.f32 %v1582_v49, %v804_v22 }
 0x105   : > { %v667_v29 = vpop.f32.mrf.mxu0  ;;  %v731_v30 = vpop.f32.mrf.mxu1 }
 0x106   : > { %1019 = vst.msk [vmem:[%s1594_s29 + $0x8] sm:$0xf] %vm1016_vm3, %v1285_v25  ;;  %1035 = vst.msk [vmem:[%s1594_s29 + $0x48] sm:$0xf] %vm1016_vm3, %v1301_v26  ;;  %v859_v31 = vmax.f32 %v827_v27, 0.0  ;;  %v875_v32 = vmax.f32 %v843_v28, 0.0  ;;  %v789_v33 = vmul.f32 %v1577_v47, %v667_v29  ;;  %v805_v34 = vmul.f32 %v1577_v47, %v731_v30 }
 0x107   : > { %v669_v35 = vpop.f32.mrf.mxu0  ;;  %v733_v36 = vpop.f32.mrf.mxu1 }
 0x108   : > { %v1286_v37 = vpack.c.bf16 %v859_v31, %v859_v31  ;;  %v1302_v38 = vpack.c.bf16 %v875_v32, %v875_v32  ;;  %v828_v39 = vadd.f32 %v1582_v49, %v789_v33  ;;  %v844_v40 = vadd.f32 %v1582_v49, %v805_v34 }
 0x109   : > { %v670_v41 = vpop.f32.mrf.mxu0  ;;  %v734_v42 = vpop.f32.mrf.mxu1 }
 0x10a   : > { %1020 = vst.msk [vmem:[%s1594_s29 + $0xc] sm:$0xf] %vm1016_vm3, %v1286_v37  ;;  %1036 = vst.msk [vmem:[%s1594_s29 + $0x4c] sm:$0xf] %vm1016_vm3, %v1302_v38  ;;  %v860_v43 = vmax.f32 %v828_v39, 0.0  ;;  %v876_v44 = vmax.f32 %v844_v40, 0.0  ;;  %v790_v45 = vmul.f32 %v1577_v47, %v670_v41  ;;  %v806_v46 = vmul.f32 %v1577_v47, %v734_v42 }
 0x10b   : > { %v672_v48 = vpop.f32.mrf.mxu0  ;;  %v736_v50 = vpop.f32.mrf.mxu1 }
 0x10c   : > { %v1287_v51 = vpack.c.bf16 %v860_v43, %v860_v43  ;;  %v1303_v52 = vpack.c.bf16 %v876_v44, %v876_v44  ;;  %v829_v53 = vadd.f32 %v1582_v49, %v790_v45  ;;  %v845_v54 = vadd.f32 %v1582_v49, %v806_v46 }
 0x10d   : > { %v675_v55 = vpop.f32.mrf.mxu0  ;;  %v739_v56 = vpop.f32.mrf.mxu1 }
 0x10e   : > { %1021 = vst.msk [vmem:[%s1594_s29 + $0x10] sm:$0xf] %vm1016_vm3, %v1287_v51  ;;  %1037 = vst.msk [vmem:[%s1594_s29 + $0x50] sm:$0xf] %vm1016_vm3, %v1303_v52  ;;  %v861_v57 = vmax.f32 %v829_v53, 0.0  ;;  %v877_v58 = vmax.f32 %v845_v54, 0.0  ;;  %v791_v59 = vmul.f32 %v1577_v47, %v675_v55  ;;  %v807_v60 = vmul.f32 %v1577_v47, %v739_v56 }
 0x10f   : > { %v677_v61 = vpop.f32.mrf.mxu0  ;;  %v741_v62 = vpop.f32.mrf.mxu1 }
 0x110   : > { %v1288_v63 = vpack.c.bf16 %v861_v57, %v861_v57  ;;  %v1304_v0 = vpack.c.bf16 %v877_v58, %v877_v58  ;;  %v830_v1 = vadd.f32 %v1582_v49, %v791_v59  ;;  %v846_v2 = vadd.f32 %v1582_v49, %v807_v60 }
 0x111   : > { %v678_v3 = vpop.f32.mrf.mxu0  ;;  %v742_v4 = vpop.f32.mrf.mxu1 }
 0x112   : > { %1022 = vst.msk [vmem:[%s1594_s29 + $0x14] sm:$0xf] %vm1016_vm3, %v1288_v63  ;;  %1038 = vst.msk [vmem:[%s1594_s29 + $0x54] sm:$0xf] %vm1016_vm3, %v1304_v0  ;;  %v862_v5 = vmax.f32 %v830_v1, 0.0  ;;  %v878_v6 = vmax.f32 %v846_v2, 0.0  ;;  %v792_v7 = vmul.f32 %v1577_v47, %v678_v3  ;;  %v808_v8 = vmul.f32 %v1577_v47, %v742_v4 }
 0x113   : > { %v680_v9 = vpop.f32.mrf.mxu0  ;;  %v744_v10 = vpop.f32.mrf.mxu1 }
 0x114   : > { %v1289_v11 = vpack.c.bf16 %v862_v5, %v862_v5  ;;  %v1305_v12 = vpack.c.bf16 %v878_v6, %v878_v6  ;;  %v831_v13 = vadd.f32 %v1582_v49, %v792_v7  ;;  %v847_v14 = vadd.f32 %v1582_v49, %v808_v8 }
 0x115   : > { %v683_v15 = vpop.f32.mrf.mxu0  ;;  %v747_v16 = vpop.f32.mrf.mxu1 }
 0x116   : > { %1023 = vst.msk [vmem:[%s1594_s29 + $0x18] sm:$0xf] %vm1016_vm3, %v1289_v11  ;;  %1039 = vst.msk [vmem:[%s1594_s29 + $0x58] sm:$0xf] %vm1016_vm3, %v1305_v12  ;;  %v863_v17 = vmax.f32 %v831_v13, 0.0  ;;  %v879_v18 = vmax.f32 %v847_v14, 0.0  ;;  %v793_v19 = vmul.f32 %v1577_v47, %v683_v15  ;;  %v809_v20 = vmul.f32 %v1577_v47, %v747_v16 }
 0x117   : > { %v685_v21 = vpop.f32.mrf.mxu0  ;;  %v749_v22 = vpop.f32.mrf.mxu1 }
 0x118   : > { %v1290_v23 = vpack.c.bf16 %v863_v17, %v863_v17  ;;  %v1306_v24 = vpack.c.bf16 %v879_v18, %v879_v18  ;;  %v832_v25 = vadd.f32 %v1582_v49, %v793_v19  ;;  %v848_v26 = vadd.f32 %v1582_v49, %v809_v20 }
 0x119   : > { %v686_v27 = vpop.f32.mrf.mxu0  ;;  %v750_v28 = vpop.f32.mrf.mxu1 }
 0x11a   : > { %1024 = vst.msk [vmem:[%s1594_s29 + $0x1c] sm:$0xf] %vm1016_vm3, %v1290_v23  ;;  %1040 = vst.msk [vmem:[%s1594_s29 + $0x5c] sm:$0xf] %vm1016_vm3, %v1306_v24  ;;  %v864_v29 = vmax.f32 %v832_v25, 0.0  ;;  %v880_v30 = vmax.f32 %v848_v26, 0.0  ;;  %v794_v31 = vmul.f32 %v1577_v47, %v686_v27  ;;  %v810_v32 = vmul.f32 %v1577_v47, %v750_v28 }
 0x11b   : > { %v688_v33 = vpop.f32.mrf.mxu0  ;;  %v752_v34 = vpop.f32.mrf.mxu1 }
 0x11c   : > { %v1291_v35 = vpack.c.bf16 %v864_v29, %v864_v29  ;;  %v1307_v36 = vpack.c.bf16 %v880_v30, %v880_v30  ;;  %v833_v37 = vadd.f32 %v1582_v49, %v794_v31  ;;  %v849_v38 = vadd.f32 %v1582_v49, %v810_v32 }
 0x11d   : > { %v691_v39 = vpop.f32.mrf.mxu0  ;;  %v755_v40 = vpop.f32.mrf.mxu1 }
 0x11e   : > { %1025 = vst.msk [vmem:[%s1594_s29 + $0x20] sm:$0xf] %vm1016_vm3, %v1291_v35  ;;  %1041 = vst.msk [vmem:[%s1594_s29 + $0x60] sm:$0xf] %vm1016_vm3, %v1307_v36  ;;  %v865_v41 = vmax.f32 %v833_v37, 0.0  ;;  %v881_v42 = vmax.f32 %v849_v38, 0.0  ;;  %v795_v43 = vmul.f32 %v1577_v47, %v691_v39  ;;  %v811_v44 = vmul.f32 %v1577_v47, %v755_v40 }
 0x11f   : > { %v693_v45 = vpop.f32.mrf.mxu0  ;;  %v757_v46 = vpop.f32.mrf.mxu1 }
 0x120   : > { %v1292_v48 = vpack.c.bf16 %v865_v41, %v865_v41  ;;  %v1308_v50 = vpack.c.bf16 %v881_v42, %v881_v42  ;;  %v834_v51 = vadd.f32 %v1582_v49, %v795_v43  ;;  %v850_v52 = vadd.f32 %v1582_v49, %v811_v44 }
 0x121   : > { %v694_v53 = vpop.f32.mrf.mxu0  ;;  %v758_v54 = vpop.f32.mrf.mxu1 }
 0x122   : > { %1026 = vst.msk [vmem:[%s1594_s29 + $0x24] sm:$0xf] %vm1016_vm3, %v1292_v48  ;;  %1042 = vst.msk [vmem:[%s1594_s29 + $0x64] sm:$0xf] %vm1016_vm3, %v1308_v50  ;;  %v866_v55 = vmax.f32 %v834_v51, 0.0  ;;  %v882_v56 = vmax.f32 %v850_v52, 0.0  ;;  %v796_v57 = vmul.f32 %v1577_v47, %v694_v53  ;;  %v812_v58 = vmul.f32 %v1577_v47, %v758_v54 }
 0x123   : > { %v696_v59 = vpop.f32.mrf.mxu0  ;;  %v760_v60 = vpop.f32.mrf.mxu1 }
 0x124   : > { %v1293_v61 = vpack.c.bf16 %v866_v55, %v866_v55  ;;  %v1309_v62 = vpack.c.bf16 %v882_v56, %v882_v56  ;;  %v835_v63 = vadd.f32 %v1582_v49, %v796_v57  ;;  %v851_v0 = vadd.f32 %v1582_v49, %v812_v58 }
 0x125   : > { %v699_v1 = vpop.f32.mrf.mxu0  ;;  %v763_v2 = vpop.f32.mrf.mxu1 }
 0x126   : > { %1027 = vst.msk [vmem:[%s1594_s29 + $0x28] sm:$0xf] %vm1016_vm3, %v1293_v61  ;;  %1043 = vst.msk [vmem:[%s1594_s29 + $0x68] sm:$0xf] %vm1016_vm3, %v1309_v62  ;;  %v867_v3 = vmax.f32 %v835_v63, 0.0  ;;  %v883_v4 = vmax.f32 %v851_v0, 0.0  ;;  %v797_v5 = vmul.f32 %v1577_v47, %v699_v1  ;;  %v813_v6 = vmul.f32 %v1577_v47, %v763_v2 }
 0x127   : > { %v701_v7 = vpop.f32.mrf.mxu0  ;;  %v765_v8 = vpop.f32.mrf.mxu1 }
 0x128   : > { %v1294_v9 = vpack.c.bf16 %v867_v3, %v867_v3  ;;  %v1310_v10 = vpack.c.bf16 %v883_v4, %v883_v4  ;;  %v836_v11 = vadd.f32 %v1582_v49, %v797_v5  ;;  %v852_v12 = vadd.f32 %v1582_v49, %v813_v6 }
 0x129   : > { %v702_v13 = vpop.f32.mrf.mxu0  ;;  %v766_v14 = vpop.f32.mrf.mxu1 }
 0x12a   : > { %1028 = vst.msk [vmem:[%s1594_s29 + $0x2c] sm:$0xf] %vm1016_vm3, %v1294_v9  ;;  %1044 = vst.msk [vmem:[%s1594_s29 + $0x6c] sm:$0xf] %vm1016_vm3, %v1310_v10  ;;  %v868_v15 = vmax.f32 %v836_v11, 0.0  ;;  %v884_v16 = vmax.f32 %v852_v12, 0.0  ;;  %v798_v17 = vmul.f32 %v1577_v47, %v702_v13  ;;  %v814_v18 = vmul.f32 %v1577_v47, %v766_v14 }
 0x12b   : > { %v704_v19 = vpop.f32.mrf.mxu0  ;;  %v768_v20 = vpop.f32.mrf.mxu1 }
 0x12c   : > { %v1295_v21 = vpack.c.bf16 %v868_v15, %v868_v15  ;;  %v1311_v22 = vpack.c.bf16 %v884_v16, %v884_v16  ;;  %v837_v23 = vadd.f32 %v1582_v49, %v798_v17  ;;  %v853_v24 = vadd.f32 %v1582_v49, %v814_v18 }
 0x12d   : > { %v707_v25 = vpop.f32.mrf.mxu0  ;;  %v771_v26 = vpop.f32.mrf.mxu1 }
 0x12e   : > { %1029 = vst.msk [vmem:[%s1594_s29 + $0x30] sm:$0xf] %vm1016_vm3, %v1295_v21  ;;  %1045 = vst.msk [vmem:[%s1594_s29 + $0x70] sm:$0xf] %vm1016_vm3, %v1311_v22  ;;  %v869_v27 = vmax.f32 %v837_v23, 0.0  ;;  %v885_v28 = vmax.f32 %v853_v24, 0.0  ;;  %v799_v29 = vmul.f32 %v1577_v47, %v707_v25  ;;  %v815_v30 = vmul.f32 %v1577_v47, %v771_v26 }
 0x12f   : > { %v709_v31 = vpop.f32.mrf.mxu0  ;;  %v773_v32 = vpop.f32.mrf.mxu1 }
 0x130   : > { %v1296_v33 = vpack.c.bf16 %v869_v27, %v869_v27  ;;  %v1312_v34 = vpack.c.bf16 %v885_v28, %v885_v28  ;;  %v838_v35 = vadd.f32 %v1582_v49, %v799_v29  ;;  %v854_v36 = vadd.f32 %v1582_v49, %v815_v30 }
 0x131   : > { %v710_v37 = vpop.f32.mrf.mxu0  ;;  %v774_v38 = vpop.f32.mrf.mxu1 }
 0x132   : > { %1030 = vst.msk [vmem:[%s1594_s29 + $0x34] sm:$0xf] %vm1016_vm3, %v1296_v33  ;;  %1046 = vst.msk [vmem:[%s1594_s29 + $0x74] sm:$0xf] %vm1016_vm3, %v1312_v34  ;;  %v870_v39 = vmax.f32 %v838_v35, 0.0  ;;  %v886_v40 = vmax.f32 %v854_v36, 0.0  ;;  %v800_v41 = vmul.f32 %v1577_v47, %v710_v37  ;;  %v816_v42 = vmul.f32 %v1577_v47, %v774_v38 }
 0x133   : > { %v712_v43 = vpop.f32.mrf.mxu0  ;;  %v776_v44 = vpop.f32.mrf.mxu1 }
 0x134   : > { %v1297_v45 = vpack.c.bf16 %v870_v39, %v870_v39  ;;  %v1313_v46 = vpack.c.bf16 %v886_v40, %v886_v40  ;;  %v839_v48 = vadd.f32 %v1582_v49, %v800_v41  ;;  %v855_v50 = vadd.f32 %v1582_v49, %v816_v42 }
 0x136   : > { %1031 = vst.msk [vmem:[%s1594_s29 + $0x38] sm:$0xf] %vm1016_vm3, %v1297_v45  ;;  %1047 = vst.msk [vmem:[%s1594_s29 + $0x78] sm:$0xf] %vm1016_vm3, %v1313_v46  ;;  %v871_v51 = vmax.f32 %v839_v48, 0.0  ;;  %v887_v52 = vmax.f32 %v855_v50, 0.0 }
 0x138   : > { %v1298_v53 = vpack.c.bf16 %v871_v51, %v871_v51  ;;  %v1314_v54 = vpack.c.bf16 %v887_v52, %v887_v52 }
 0x13a   : > { %1032 = vst.msk [vmem:[%s1594_s29 + $0x3c] sm:$0xf] %vm1016_vm3, %v1298_v53  ;;  %1048 = vst.msk [vmem:[%s1594_s29 + $0x7c] sm:$0xf] %vm1016_vm3, %v1314_v54 }
 0x13b PF: > { %s14_s17 = sadd.s32 1, %s1441_s17   ;;  %s1732_s15 = smov %s1437_s16 }
 0x13c   : > { %p11_p5 = scmp.ge.s32.totalorder %s14_s17, 4   ;;  %s1733_s16 = smov %s1735_s18 }
 0x13e   :  { %13 = sbr.rel (!%p11_p5) target bundleno = 2 (0x2), region = 75 }

</bundles_post_ra>
